<compile_context>
chip_gen: v5e
topology: v5e:2x2
jax: 0.10.0
libtpu: 0.0.40
codegen_flags: <defaults>
</compile_context>

<pallas_src>
import functools

import jax
import jax.numpy as jnp
from jax.experimental import pallas as pl
from jax.experimental.pallas import tpu as pltpu


def _round_up(x, m):
    return (x + m - 1) // m * m


def ranzcr_head_kernel(x_ref, w_ref, b_ref, o_ref):
    # x_ref: (TB, HW, C_pad)  bf16/f32  backbone features, channels on lanes
    # w_ref: (C_pad, OUT_pad) f32       fc weight (transposed, zero-padded)
    # b_ref: (1, OUT_pad)     f32       fc bias (zero-padded)
    # o_ref: (TB, OUT_pad)    f32       logits (padded lanes, lane-dense store)
    hw = x_ref.shape[1]
    # AdaptiveAvgPool2d(1): f32-accumulated sum over the spatial (sublane) axis.
    pooled = jnp.sum(x_ref[...], axis=1, dtype=jnp.float32) * (1.0 / hw)  # (TB, C_pad)
    # fc(pooled): MXU matmul + bias broadcast. Padded K/N columns are exact zeros.
    logits = jnp.dot(pooled, w_ref[...], preferred_element_type=jnp.float32) + b_ref[...]
    # 5x Dropout(0.5) averaged is the identity in eval mode -> write directly.
    o_ref[...] = logits.astype(o_ref.dtype)


def _pick_batch_tile(B, HW, C_pad, itemsize, budget_bytes=8 * 1024 * 1024):
    """Batch tile: multiple of 8, double-buffered input tile fits the budget."""
    if B <= 8:
        return B
    per_row = HW * C_pad * itemsize
    tb = budget_bytes // (2 * per_row)           # x2: double-buffered input DMA
    tb = max(8, (tb // 8) * 8)
    return int(min(B, tb))


@functools.partial(jax.jit, static_argnames=("batch_tile",))
def ranzcr_effinet_head(features_nchw, fc_weight, fc_bias, *, batch_tile=None):
    """features_nchw: (B, C, H, W); fc_weight: (out_dim, C); fc_bias: (out_dim,)."""
    B, C, H, W = features_nchw.shape
    out_dim = fc_weight.shape[0]
    HW = H * W
    C_pad = _round_up(C, 128)
    OUT_pad = _round_up(out_dim, 128)

    # NCHW -> (B, HW, C): channels land on the lane axis.
    # TODO(synk): ideally the backbone emits NHWC so this transpose is a free view.
    x = jnp.transpose(features_nchw, (0, 2, 3, 1)).reshape(B, HW, C)
    if C_pad != C:
        x = jnp.pad(x, ((0, 0), (0, 0), (0, C_pad - C)))
    # Keep the backbone dtype (bf16 recommended) — no f32 upcast of the big tensor.

    w = jnp.zeros((C_pad, OUT_pad), jnp.float32)
    w = w.at[:C, :out_dim].set(fc_weight.T.astype(jnp.float32))
    b = jnp.zeros((1, OUT_pad), jnp.float32)
    b = b.at[0, :out_dim].set(fc_bias.astype(jnp.float32))

    if batch_tile is None:
        TB = _pick_batch_tile(B, HW, C_pad, x.dtype.itemsize)
    else:
        TB = B if B <= batch_tile else max(8, (batch_tile // 8) * 8)

    grid = (pl.cdiv(B, TB),)

    out_padded = pl.pallas_call(
        ranzcr_head_kernel,
        out_shape=jax.ShapeDtypeStruct((B, OUT_pad), jnp.float32),
        grid=grid,
        in_specs=[
            pl.BlockSpec((TB, HW, C_pad), lambda i: (i, 0, 0)),   # batch-tiled features
            pl.BlockSpec((C_pad, OUT_pad), lambda i: (0, 0)),     # whole fc weight
            pl.BlockSpec((1, OUT_pad), lambda i: (0, 0)),         # whole fc bias
        ],
        out_specs=pl.BlockSpec((TB, OUT_pad), lambda i: (i, 0)),
        compiler_params=pltpu.CompilerParams(
            dimension_semantics=("parallel",),  # shard batch tiles across v7x's 2 TCs
        ),
    )(x, w, b)

    return out_padded[:, :out_dim]


if __name__ == "__main__":
    # Small shapes consistent with the forward: stand-in backbone feature map
    # (B=16, n_features=32, 8x8 spatial), out_dim=11. batch_tile=8 -> grid=(2,)
    # so the double-buffered batch pipeline is actually exercised.
    B, C, H, W, OUT = 16, 32, 8, 8, 11

    key = jax.random.PRNGKey(0)
    k_feat, k_w, k_b = jax.random.split(key, 3)

    # Features kept in bf16 end-to-end (halves HBM traffic); params synthetic.
    features = jax.random.normal(k_feat, (B, C, H, W), dtype=jnp.float32).astype(jnp.bfloat16)
    fc_weight = jax.random.normal(k_w, (OUT, C), dtype=jnp.float32) * 0.05
    fc_bias = jax.random.normal(k_b, (OUT,), dtype=jnp.float32) * 0.01

    out = ranzcr_effinet_head(features, fc_weight, fc_bias, batch_tile=8)
    out = jax.block_until_ready(out)

    # Pure-JAX reference of the same head (eval-mode dropout == identity).
    x_f32 = features.astype(jnp.float32)
    pooled_ref = jnp.mean(x_f32.reshape(B, C, H * W), axis=-1)
    ref = pooled_ref @ fc_weight.T + fc_bias

    assert out.shape == (B, OUT)
    assert jnp.allclose(out, ref, atol=2e-3, rtol=2e-3), "mismatch vs reference"
    print("KERNEL_OK")
</pallas_src>

<mosaic_0001>
module attributes {stable_mosaic.version = 11 : i64} {
  func.func @ranzcr_head_kernel(%arg0: i32, %arg1: memref<8x64x128xbf16, #tpu.memory_space<vmem>>, %arg2: memref<128x128xf32, #tpu.memory_space<vmem>>, %arg3: memref<1x128xf32, #tpu.memory_space<vmem>>, %arg4: memref<8x128xf32, #tpu.memory_space<vmem>>) attributes {dimension_semantics = [#tpu.dimension_semantics<parallel>], iteration_bounds = array<i64: 2>, scalar_prefetch = 0 : i64, scratch_operands = 0 : i64, tpu.core_type = #tpu.core_type<tc>, window_params = [{transform_indices = @transform_0, window_bounds = array<i64: 8, 64, 128>}, {pipeline_mode = #tpu.pipeline_mode<synchronous>, transform_indices = @transform_1, window_bounds = array<i64: 128, 128>}, {pipeline_mode = #tpu.pipeline_mode<synchronous>, transform_indices = @transform_2, window_bounds = array<i64: 1, 128>}, {transform_indices = @transform_3, window_bounds = array<i64: 8, 128>}]} {
    %c0 = arith.constant 0 : index
    %c0_0 = arith.constant 0 : index
    %c0_1 = arith.constant 0 : index
    %0 = vector.load %arg1[%c0, %c0_0, %c0_1] : memref<8x64x128xbf16, #tpu.memory_space<vmem>>, vector<8x64x128xbf16>
    %1 = arith.extf %0 : vector<8x64x128xbf16> to vector<8x64x128xf32>
    %cst = arith.constant dense<0.000000e+00> : vector<8x128xf32>
    %2 = vector.multi_reduction <add>, %1, %cst [1] : vector<8x64x128xf32> to vector<8x128xf32>
    %cst_2 = arith.constant 1.562500e-02 : f32
    %3 = vector.broadcast %cst_2 : f32 to vector<8x128xf32>
    %4 = arith.mulf %2, %3 : vector<8x128xf32>
    %c0_3 = arith.constant 0 : index
    %c0_4 = arith.constant 0 : index
    %5 = vector.load %arg2[%c0_3, %c0_4] : memref<128x128xf32, #tpu.memory_space<vmem>>, vector<128x128xf32>
    %cst_5 = arith.constant dense<0.000000e+00> : vector<8x128xf32>
    %6 = tpu.matmul %4, %5, %cst_5 {dimension_numbers = #tpu.dot_dimension_numbers<[1], [0], [0], [1], [0, 0, 1, 1], [], []>} : vector<8x128xf32>, vector<128x128xf32>, vector<8x128xf32> -> vector<8x128xf32>
    %c0_6 = arith.constant 0 : index
    %c0_7 = arith.constant 0 : index
    %7 = vector.load %arg3[%c0_6, %c0_7] : memref<1x128xf32, #tpu.memory_space<vmem>>, vector<1x128xf32>
    %8 = vector.broadcast %7 : vector<1x128xf32> to vector<8x128xf32>
    %9 = arith.addf %6, %8 : vector<8x128xf32>
    %c0_8 = arith.constant 0 : index
    %c0_9 = arith.constant 0 : index
    %10 = vector.load %arg4[%c0_8, %c0_9] : memref<8x128xf32, #tpu.memory_space<vmem>>, vector<8x128xf32>
    tpu.vector_store %arg4[%c0_8, %c0_9], %9 {strides = array<i32>} : memref<8x128xf32, #tpu.memory_space<vmem>>, vector<8x128xf32>,
    return
  }
  func.func @transform_0(%arg0: i32) -> (i32, i32, i32) {
    %c0_i32 = arith.constant 0 : i32
    %c0_i32_0 = arith.constant 0 : i32
    %c0_i32_1 = arith.constant 0 : i32
    return %arg0, %c0_i32, %c0_i32_0 : i32, i32, i32
  }
  func.func @transform_1(%arg0: i32) -> (i32, i32) {
    %c0_i32 = arith.constant 0 : i32
    %c0_i32_0 = arith.constant 0 : i32
    %c0_i32_1 = arith.constant 0 : i32
    return %c0_i32, %c0_i32_0 : i32, i32
  }
  func.func @transform_2(%arg0: i32) -> (i32, i32) {
    %c0_i32 = arith.constant 0 : i32
    %c0_i32_0 = arith.constant 0 : i32
    %c0_i32_1 = arith.constant 0 : i32
    return %c0_i32, %c0_i32_0 : i32, i32
  }
  func.func @transform_3(%arg0: i32) -> (i32, i32) {
    %c0_i32 = arith.constant 0 : i32
    %c0_i32_0 = arith.constant 0 : i32
    return %arg0, %c0_i32 : i32, i32
  }
}

</mosaic_0001>

<bundles_post_ra>
// kernel: ranzcr_effinet_head.1
= control target key start
LH: loop header
LB: loop body
LE: loop exit
PB: predicated region body
PF: predicated region fallthrough
CT: control target
= control target key end

     0   :  { %8 = vsyncpa [#allocation3], 0  ;;  %s1220_s0 = inlined_call_operand.vmem [shape: bf16[16,64,128], index: 0, kind: input, shape index: {}]   ;;  %s1221_s1 = inlined_call_operand.vmem [shape: f32[128,128], index: 1, kind: input, shape index: {}]   ;;  %s1222_s2 = inlined_call_operand.vmem [shape: f32[1,128], index: 2, kind: input, shape index: {}]   ;;  %s1223_s3 = inlined_call_operand.hbm [shape: f32[16,128], index: 3, kind: output, shape index: {}]  }
   0x1   :  { %10 = vsyncpa [#allocation3 + $0x1], 0  ;;  %s849_s12 = smov 0   ;;  %s851_s13 = smov 0  }
   0x2   :  { %s853_s14 = smov 0   ;;  %s855_s15 = smov 0  }
   0x3 LB: > { %s552_s16 = sadd.s32 4294967295, %s827_s15   ;;  %s553_s17 = sadd.s32 4294967294, %s827_s15   ;;  %s827_s15 = sphi %s855_s15, %s1260_s15   ;;  %s823_s14 = sphi %s853_s14, %s1259_s14   ;;  %s819_s13 = sphi %s851_s13, %s1258_s13   ;;  %s815_s12 = sphi %s849_s12, %s1257_s12  }
   0x4   : > { %s872_s18 = sadd.s32 1, %s827_s15   ;;  %s91_s19 = sadd.s32 1, %s823_s14 }
   0x5   : > { %s88_s20 = ssub.s32 %s827_s15, %s872_s18  ;;  %p101_p0 = scmp.ne.s32.totalorder %s823_s14, %s819_s13 }
   0x6   : > { %p89_p1 = scmp.eq.s32.totalorder %s88_s20, 0  ;;  %p102_p2 = scmp.eq.s32.totalorder %s552_s16, 1 }
   0x7   : > { %p107_p3 = scmp.ne.s32.totalorder %s819_s13, %s815_s12  ;;  %p108_p4 = scmp.eq.s32.totalorder %s553_s17, 1 }
   0x8   : > { %s882_s21 = scalar_select %p89_p1, %s823_s14, %s91_s19  }
   0x9   : > { %p884_p5 = por %p102_p2, %p101_p0  ;;  %p888_p6 = por %p108_p4, %p107_p3 }
   0xa   : > { %p556_p7 = scmp.ge.s32.totalorder %s827_s15, 1  ;;  %p142_p8 = scmp.lt.s32.totalorder %s827_s15, 3 }
   0xc   : > { %p143_p9 = pnand %p556_p7, %p142_p8 }
   0xd   : > { %s900_s28 = sshll.u32 (!%p143_p9), %s552_s16, 3  ;;  %s164_s25 = sand.u32 (!%p143_p9), 1, %s819_s13  }
   0xe   : > { %146 = sbr.rel (%p143_p9) target bundleno = 209 (0xd1), region = 32  ;;  %p168_p10 = scmp.lt.s32.totalorder (!%p143_p9), %s900_s28, 15 }
   0xf   : > { %s557_s26 = sshll.u32 (!%p143_p9), %s164_s25, 3  ;;  %s489_s30 = scalar_lea.hbm (!%p143_p9), %s1223_s3, %s900_s28 }
  0x10   : > { %s166_s6 = scalar_lea.vmem (!%p143_p9), [#allocation2], %s557_s26  ;;  %s493_s8 = sshll.u32 (!%p143_p9), %s489_s30, 4  ;;  %s494_s8 = int_to_ptr.hbm [resolvable:$true] %s493_s8 }
  0x11   : > { %s479_s9 = scalar_lea.sflag (!%p143_p9), [#allocation3], %s164_s25  ;;  %s779_s10 = sshra.s32 (!%p143_p9), %s494_s8, 4  ;;  %s780_s10 = int_to_ptr.hbm [resolvable:$true] %s779_s10 }
  0x12   : > { %s781_s11 = scalar_lea.hbm (!%p143_p9), %s780_s10, 8  ;;  %s785_s17 = scalar_lea.hbm (!%p143_p9), %s1223_s3, 16 }
  0x13   : > { %v429_v0 = vld [vmem:[%s1221_s1 + $0x78] sm:$0xff]  ;;  %v428_v1 = vld [vmem:[%s1221_s1 + $0x70] sm:$0xff]  ;;  %v427_v2 = vld [vmem:[%s1221_s1 + $0x68] sm:$0xff]  ;;  %s169_s4 = scalar_select %p168_p10, %s900_s28, 15  ;;  %vm442_vm0 = vcmask 1041409   ;;  %vm444_vm1 = vcmask 1042434  }
  0x14   : > { %457 = vmatpush.msra.mxu0 %v429_v0  ;;  %v426_v3 = vld [vmem:[%s1221_s1 + $0x60] sm:$0xff]  ;;  %v425_v4 = vld [vmem:[%s1221_s1 + $0x58] sm:$0xff]  ;;  %v424_v5 = vld [vmem:[%s1221_s1 + $0x50] sm:$0xff]  ;;  %vm446_vm2 = vcmask 1043459   ;;  %vm448_vm3 = vcmask 1044484   ;;  %vm450_vm4 = vcmask 1045509   ;;  %p782_p11 = scmp.ne.s32.totalorder %s780_s10, %s781_s11  ;;  %p786_p0 = scmp.lt.s32.totalorder %s780_s10, %s1223_s3 }
  0x15   : > { %s565_s7 = sshll.u32 %s169_s4, 5  ;;  %v423_v9 = vld [vmem:[%s1221_s1 + $0x48] sm:$0xff]  ;;  %v422_v37 = vld [vmem:[%s1221_s1 + $0x40] sm:$0xff]  ;;  %v421_v50 = vld [vmem:[%s1221_s1 + $0x38] sm:$0xff]  ;;  %vm452_vm5 = vcmask 1046534   ;;  %vm454_vm6 = vcmask 1047559   ;;  %p787_p1 = scmp.lt.s32.totalorder %s785_s17, %s781_s11 }
  0x16   : > { %458 = vmatpush.msra.mxu0 %v428_v1  ;;  %s919_s19 = scalar_lea.vmem %s1220_s0, %s565_s7  ;;  %v420_v63 = vld [vmem:[%s1221_s1 + $0x30] sm:$0xff]  ;;  %v419_v20 = vld [vmem:[%s1221_s1 + $0x28] sm:$0xff]  ;;  %s491_s7 = sshll.u32 %s166_s6, 4  ;;  %s492_s7 = int_to_ptr.vmem [resolvable:$true] %s491_s7 }
  0x17   : > { %v922_v6 = vld [vmem:[%s919_s19] sm:$0xff]   ;;  %v925_v7 = vld [vmem:[%s919_s19 + $0x8] sm:$0xff]   ;;  %v928_v8 = vld [vmem:[%s919_s19 + $0x10] sm:$0xff]   ;;  %p783_p12 = pnand %p782_p11, %p884_p5  ;;  %p788_p2 = por %p787_p1, %p786_p0 }
  0x18   : > { %459 = vmatpush.msra.mxu0 %v427_v2  ;;  %v568_v10 = vunpack.c.l.bf16 %v922_v6  ;;  %v569_v11 = vunpack.c.h.bf16 %v922_v6  ;;  %v572_v12 = vunpack.c.l.bf16 %v925_v7  ;;  %v573_v13 = vunpack.c.h.bf16 %v925_v7  ;;  %v938_v14 = vld [vmem:[%s919_s19 + $0x18] sm:$0xff]   ;;  %v941_v15 = vld [vmem:[%s919_s19 + $0x20] sm:$0xff]   ;;  %v944_v16 = vld [vmem:[%s919_s19 + $0x28] sm:$0xff]  }
  0x19   : > { %v951_v21 = vld [vmem:[%s919_s19 + $0x30] sm:$0xff]   ;;  %v954_v22 = vld [vmem:[%s919_s19 + $0x38] sm:$0xff]   ;;  %v957_v23 = vld [vmem:[%s919_s19 + $0x40] sm:$0xff]   ;;  %v584_v24 = vunpack.c.l.bf16 %v941_v15  ;;  %v585_v25 = vunpack.c.h.bf16 %v941_v15  ;;  %v588_v26 = vunpack.c.l.bf16 %v944_v16  ;;  %p784_p13 = pneg %p783_p12 }
  0x1a   : > { %460 = vmatpush.msra.mxu0 %v426_v3  ;;  %v964_v28 = vld [vmem:[%s919_s19 + $0x48] sm:$0xff]   ;;  %v967_v29 = vld [vmem:[%s919_s19 + $0x50] sm:$0xff]   ;;  %v970_v30 = vld [vmem:[%s919_s19 + $0x58] sm:$0xff]   ;;  %v600_v38 = vunpack.c.l.bf16 %v957_v23  ;;  %v601_v39 = vunpack.c.h.bf16 %v957_v23 }
  0x1b   : > { %v977_v35 = vld [vmem:[%s919_s19 + $0x60] sm:$0xff]   ;;  %v980_v36 = vld [vmem:[%s919_s19 + $0x68] sm:$0xff]   ;;  %v604_v40 = vunpack.c.l.bf16 %v964_v28  ;;  %v990_v42 = vld [vmem:[%s919_s19 + $0x70] sm:$0xff]   ;;  %p789_p3 = pnand %p788_p2, %p784_p13 }
  0x1c   : > { %461 = vmatpush.msra.mxu0 %v425_v4  ;;  %v993_v43 = vld [vmem:[%s919_s19 + $0x78] sm:$0xff]   ;;  %v1000_v48 = vld [vmem:[%s919_s19 + $0x80] sm:$0xff]   ;;  %v1003_v49 = vld [vmem:[%s919_s19 + $0x88] sm:$0xff]   ;;  %v616_v51 = vunpack.c.l.bf16 %v977_v35  ;;  %v617_v52 = vunpack.c.h.bf16 %v977_v35  ;;  %v620_v53 = vunpack.c.l.bf16 %v980_v36 }
  0x1d   : > { %v1013_v55 = vld [vmem:[%s919_s19 + $0x90] sm:$0xff]   ;;  %v1016_v56 = vld [vmem:[%s919_s19 + $0x98] sm:$0xff]   ;;  %v713_v61 = vld [vmem:[%s919_s19 + $0xa0] sm:$0xff]   ;;  %v632_v0 = vunpack.c.l.bf16 %v1000_v48  ;;  %v633_v1 = vunpack.c.h.bf16 %v1000_v48  ;;  %v636_v2 = vunpack.c.l.bf16 %v1003_v49 }
  0x1e   : > { %462 = vmatpush.msra.mxu0 %v424_v5  ;;  %v1024_v62 = vld [vmem:[%s919_s19 + $0xa8] sm:$0xff]   ;;  %v1034_v4 = vld [vmem:[%s919_s19 + $0xb0] sm:$0xff]   ;;  %v1037_v5 = vld [vmem:[%s919_s19 + $0xb8] sm:$0xff]   ;;  %v648_v59 = vunpack.c.l.bf16 %v713_v61  ;;  %v649_v46 = vunpack.c.h.bf16 %v713_v61 }
  0x1f   : > { %v717_v47 = vld [vmem:[%s919_s19 + $0xc0] sm:$0xff]   ;;  %v1045_v34 = vld [vmem:[%s919_s19 + $0xc8] sm:$0xff]   ;;  %v653_v33 = vunpack.c.h.bf16 %v1024_v62  ;;  %v1053_v60 = vld [vmem:[%s919_s19 + $0xd0] sm:$0xff]  }
  0x20   : > { %463 = vmatpush.msra.mxu0 %v423_v9  ;;  %v1056_v19 = vld [vmem:[%s919_s19 + $0xd8] sm:$0xff]   ;;  %v721_v61 = vld [vmem:[%s919_s19 + $0xe0] sm:$0xff]   ;;  %v722_v32 = vld [vmem:[%s919_s19 + $0xe8] sm:$0xff]   ;;  %v664_v18 = vunpack.c.l.bf16 %v717_v47  ;;  %v665_v9 = vunpack.c.h.bf16 %v717_v47  ;;  %v668_v57 = vunpack.c.l.bf16 %v1045_v34  ;;  %v672_v58 = vunpack.c.l.bf16 %v1053_v60 }
  0x21   : > { %v1070_v44 = vld [vmem:[%s919_s19 + $0xf0] sm:$0xff]   ;;  %v1073_v48 = vld [vmem:[%s919_s19 + $0xf8] sm:$0xff]   ;;  %v673_v45 = vunpack.c.h.bf16 %v1053_v60  ;;  %v680_v17 = vunpack.c.l.bf16 %v721_v61  ;;  %v681_v3 = vunpack.c.h.bf16 %v721_v61  ;;  %v685_v54 = vunpack.c.h.bf16 %v722_v32 }
  0x22   : > { %464 = vmatpush.msra.mxu0 %v422_v37  ;;  %v417_v47 = vld [vmem:[%s1221_s1 + $0x18] sm:$0xff]  ;;  %v688_v41 = vunpack.c.l.bf16 %v1070_v44  ;;  %v692_v27 = vunpack.c.l.bf16 %v1073_v48  ;;  %v416_v31 = vld [vmem:[%s1221_s1 + $0x10] sm:$0xff]  ;;  %v302_v61 = vadd.f32 %v569_v11, %v568_v10  ;;  %v354_v60 = vadd.f32 %v633_v1, %v632_v0  ;;  %v415_v11 = vld [vmem:[%s1221_s1 + $0x8] sm:$0xff] }
  0x23   : > { %v367_v37 = vadd.f32 %v649_v46, %v648_v59  ;;  %v380_v6 = vadd.f32 %v665_v9, %v664_v18  ;;  %v393_v10 = vadd.f32 %v681_v3, %v680_v17  ;;  %v1227_v46 = vunpack.c.h.bf16 %v964_v28 }
  0x24   : > { %465 = vmatpush.msra.mxu0 %v421_v50  ;;  %v652_v50 = vunpack.c.l.bf16 %v1024_v62  ;;  %v418_v62 = vld [vmem:[%s1221_s1 + $0x20] sm:$0xff]  ;;  %v303_v15 = vadd.f32 %v572_v12, %v302_v61  ;;  %v355_v17 = vadd.f32 %v636_v2, %v354_v60  ;;  %v1230_v2 = vunpack.c.l.bf16 %v928_v8 }
  0x25   : > { %v381_v35 = vadd.f32 %v668_v57, %v380_v6  ;;  %v414_v12 = vld [vmem:[%s1221_s1] sm:$0xff]  ;;  %v1232_v3 = vunpack.c.l.bf16 %v967_v29  ;;  %v1233_v9 = vunpack.c.l.bf16 %v990_v42  ;;  %v1237_v60 = vunpack.c.h.bf16 %v951_v21 }
  0x26   : > { %466 = vmatpush.msra.mxu0 %v420_v63  ;;  %v669_v63 = vunpack.c.h.bf16 %v1045_v34  ;;  %v684_v34 = vunpack.c.l.bf16 %v722_v32  ;;  %v315_v32 = vadd.f32 %v585_v25, %v584_v24  ;;  %v368_v18 = vadd.f32 %v652_v50, %v367_v37 }
  0x27   : > { %v1234_v37 = vunpack.c.l.bf16 %v1013_v55 }
  0x28   : > { %467 = vmatpush.msra.mxu0 %v419_v20  ;;  %v689_v20 = vunpack.c.h.bf16 %v1070_v44  ;;  %v328_v44 = vadd.f32 %v601_v39, %v600_v38  ;;  %v316_v23 = vadd.f32 %v588_v26, %v315_v32  ;;  %v394_v38 = vadd.f32 %v684_v34, %v393_v10 }
  0x29   : > { %v304_v26 = vadd.f32 %v573_v13, %v303_v15  ;;  %v1226_v39 = vunpack.c.h.bf16 %v944_v16  ;;  %v369_v59 = vadd.f32 %v653_v33, %v368_v18  ;;  %v382_v0 = vadd.f32 %v669_v63, %v381_v35 }
  0x2a   : > { %468 = vmatpush.msra.mxu0 %v418_v62  ;;  %v341_v62 = vadd.f32 %v617_v52, %v616_v51  ;;  %v329_v24 = vadd.f32 %v604_v40, %v328_v44  ;;  %v395_v1 = vadd.f32 %v685_v54, %v394_v38  ;;  %v1231_v13 = vunpack.c.l.bf16 %v951_v21 }
  0x2b   : > { %v317_v40 = vadd.f32 %v1226_v39, %v316_v23  ;;  %v305_v7 = vadd.f32 %v1230_v2, %v304_v26  ;;  %v1235_v33 = vunpack.c.l.bf16 %v1034_v4  ;;  %v383_v54 = vadd.f32 %v672_v58, %v382_v0 }
  0x2c   : > { %469 = vmatpush.msra.mxu0 %v417_v47  ;;  %v342_v25 = vadd.f32 %v620_v53, %v341_v62  ;;  %v330_v51 = vadd.f32 %v1227_v46, %v329_v24  ;;  %v1229_v53 = vunpack.c.h.bf16 %v1003_v49  ;;  %v396_v63 = vadd.f32 %v688_v41, %v395_v1 }
  0x2d   : > { %v318_v16 = vadd.f32 %v1231_v13, %v317_v40  ;;  %v370_v50 = vadd.f32 %v1235_v33, %v369_v59  ;;  %v1236_v47 = vunpack.c.h.bf16 %v928_v8  ;;  %v1238_v32 = vunpack.c.h.bf16 %v967_v29 }
  0x2e   : > { %470 = vmatpush.msra.mxu0 %v416_v31  ;;  %v1228_v31 = vunpack.c.h.bf16 %v980_v36  ;;  %v356_v57 = vadd.f32 %v1229_v53, %v355_v17  ;;  %v331_v28 = vadd.f32 %v1232_v3, %v330_v51  ;;  %v1239_v62 = vunpack.c.h.bf16 %v990_v42 }
  0x2f   : > { %v306_v34 = vadd.f32 %v1236_v47, %v305_v7  ;;  %v319_v61 = vadd.f32 %v1237_v60, %v318_v16  ;;  %v1240_v10 = vunpack.c.h.bf16 %v1013_v55  ;;  %v1241_v15 = vunpack.c.h.bf16 %v1034_v4 }
  0x30   : > { %v343_v52 = vadd.f32 %v1228_v31, %v342_v25  ;;  %471 = vmatpush.msra.mxu0 %v415_v11  ;;  %v357_v49 = vadd.f32 %v1234_v37, %v356_v57  ;;  %v332_v44 = vadd.f32 %v1238_v32, %v331_v28  ;;  %v384_v58 = vadd.f32 %v673_v45, %v383_v54 }
  0x31   : > { %v371_v23 = vadd.f32 %v1241_v15, %v370_v50  ;;  %v397_v41 = vadd.f32 %v689_v20, %v396_v63  ;;  %v1242_v8 = vunpack.c.l.bf16 %v938_v14  ;;  %v1243_v21 = vunpack.c.l.bf16 %v954_v22 }
  0x32   : > { %v344_v36 = vadd.f32 %v1233_v9, %v343_v52  ;;  %472 = vmatpush.msra.mxu0 %v414_v12  ;;  %v358_v11 = vadd.f32 %v1240_v10, %v357_v49  ;;  %v1244_v29 = vunpack.c.l.bf16 %v970_v30  ;;  %v1245_v42 = vunpack.c.l.bf16 %v993_v43 }
  0x33   : > { %v307_v24 = vadd.f32 %v1242_v8, %v306_v34  ;;  %v320_v25 = vadd.f32 %v1243_v21, %v319_v61  ;;  %v1246_v55 = vunpack.c.l.bf16 %v1016_v56  ;;  %v1247_v4 = vunpack.c.l.bf16 %v1037_v5 }
  0x34   : > { %v345_v6 = vadd.f32 %v1239_v62, %v344_v36  ;;  %v333_v17 = vadd.f32 %v1244_v29, %v332_v44  ;;  %v1248_v45 = vunpack.c.l.bf16 %v1056_v19  ;;  %v398_v12 = vadd.f32 %v692_v27, %v397_v41 }
  0x35   : > { %v359_v35 = vadd.f32 %v1246_v55, %v358_v11  ;;  %v372_v38 = vadd.f32 %v1247_v4, %v371_v23  ;;  %v1249_v26 = vunpack.c.h.bf16 %v938_v14  ;;  %v1250_v40 = vunpack.c.h.bf16 %v954_v22 }
  0x36   : > { %v346_v18 = vadd.f32 %v1245_v42, %v345_v6  ;;  %v385_v20 = vadd.f32 %v1248_v45, %v384_v58  ;;  %v1251_v51 = vunpack.c.h.bf16 %v970_v30  ;;  %v1252_v52 = vunpack.c.h.bf16 %v993_v43 }
  0x37   : > { %v308_v39 = vadd.f32 %v1249_v26, %v307_v24  ;;  %v321_v46 = vadd.f32 %v1250_v40, %v320_v25  ;;  %v1253_v57 = vunpack.c.h.bf16 %v1016_v56  ;;  %v1254_v0 = vunpack.c.h.bf16 %v1037_v5 }
  0x38   : > { %v334_v31 = vadd.f32 %v1251_v51, %v333_v17  ;;  %v347_v53 = vadd.f32 %v1252_v52, %v346_v18  ;;  %v1255_v27 = vunpack.c.h.bf16 %v1056_v19  ;;  %v1256_v14 = vunpack.c.h.bf16 %v1073_v48 }
  0x39   : > { %v360_v59 = vadd.f32 %v1253_v57, %v359_v35  ;;  %v373_v1 = vadd.f32 %v1254_v0, %v372_v38  ;;  %v309_v22 = vrot.slane %v308_v39, 4  ;;  %v322_v13 = vrot.slane %v321_v46, 4 }
  0x3a   : > { %v386_v2 = vadd.f32 %v1255_v27, %v385_v20  ;;  %v399_v7 = vadd.f32 %v1256_v14, %v398_v12  ;;  %v335_v16 = vrot.slane %v334_v31, 4  ;;  %v348_v30 = vrot.slane %v347_v53, 4 }
  0x3b   : > { %v361_v3 = vrot.slane %v360_v59, 4  ;;  %v374_v28 = vrot.slane %v373_v1, 4  ;;  %v310_v36 = vadd.f32 %v309_v22, %v308_v39  ;;  %v323_v56 = vadd.f32 %v322_v13, %v321_v46 }
  0x3c   : > { %v387_v43 = vrot.slane %v386_v2, 4  ;;  %v400_v9 = vrot.slane %v399_v7, 4  ;;  %v336_v37 = vadd.f32 %v335_v16, %v334_v31  ;;  %v349_v49 = vadd.f32 %v348_v30, %v347_v53 }
  0x3d   : > { %v362_v5 = vadd.f32 %v361_v3, %v360_v59  ;;  %v375_v33 = vadd.f32 %v374_v28, %v373_v1  ;;  %v311_v54 = vrot.slane %v310_v36, 2  ;;  %v324_v63 = vrot.slane %v323_v56, 2 }
  0x3e   : > { %v388_v50 = vadd.f32 %v387_v43, %v386_v2  ;;  %v401_v19 = vadd.f32 %v400_v9, %v399_v7  ;;  %v337_v48 = vrot.slane %v336_v37, 2  ;;  %v350_v47 = vrot.slane %v349_v49, 2  ;;  %v764_v7 = vld [vmem:[%s1222_s2] ss:$0 sm:$0xff] }
  0x3f   : > { %v363_v34 = vrot.slane %v362_v5, 2  ;;  %v376_v60 = vrot.slane %v375_v33, 2  ;;  %v312_v44 = vadd.f32 %v311_v54, %v310_v36  ;;  %v325_v62 = vadd.f32 %v324_v63, %v323_v56 }
  0x40   : > { %v389_v61 = vrot.slane %v388_v50, 2  ;;  %v402_v32 = vrot.slane %v401_v19, 2  ;;  %v338_v6 = vadd.f32 %v337_v48, %v336_v37  ;;  %v351_v10 = vadd.f32 %v350_v47, %v349_v49 }
  0x41   : > { %v364_v11 = vadd.f32 %v363_v34, %v362_v5  ;;  %v377_v15 = vadd.f32 %v376_v60, %v375_v33  ;;  %v313_v41 = vrot.slane %v312_v44, 1  ;;  %v326_v8 = vrot.slane %v325_v62, 1 }
  0x42   : > { %v390_v23 = vadd.f32 %v389_v61, %v388_v50  ;;  %v403_v58 = vadd.f32 %v402_v32, %v401_v19  ;;  %v339_v24 = vrot.slane %v338_v6, 1  ;;  %v352_v21 = vrot.slane %v351_v10, 1 }
  0x43   : > { %v365_v25 = vrot.slane %v364_v11, 1  ;;  %v378_v29 = vrot.slane %v377_v15, 1  ;;  %v314_v18 = vadd.f32 %v313_v41, %v312_v44  ;;  %v327_v55 = vadd.f32 %v326_v8, %v325_v62 }
  0x44   : > { %v391_v17 = vrot.slane %v390_v23, 1  ;;  %v404_v42 = vrot.slane %v403_v58, 1  ;;  %v340_v35 = vadd.f32 %v339_v24, %v338_v6  ;;  %v353_v4 = vadd.f32 %v352_v21, %v351_v10 }
  0x45   : > { %v366_v38 = vadd.f32 %v365_v25, %v364_v11  ;;  %v379_v45 = vadd.f32 %v378_v29, %v377_v15  ;;  %v406_v12 = vmul.f32 0.015625, %v314_v18  ;;  %v407_v26 = vmul.f32 0.015625, %v327_v55 }
  0x46   : > { %v392_v20 = vadd.f32 %v391_v17, %v390_v23  ;;  %v408_v39 = vmul.f32 0.015625, %v340_v35  ;;  %v405_v40 = vadd.f32 %v404_v42, %v403_v58  ;;  %v409_v46 = vmul.f32 0.015625, %v353_v4 }
  0x47   : > { %v410_v51 = vmul.f32 0.015625, %v366_v38  ;;  %v411_v31 = vmul.f32 0.015625, %v379_v45  ;;  %v443_v52 = vsel %vm442_vm0, %v407_v26, %v406_v12 }
  0x48   : > { %v412_v53 = vmul.f32 0.015625, %v392_v20  ;;  %v445_v57 = vsel %vm444_vm1, %v408_v39, %v443_v52  ;;  %v413_v59 = vmul.f32 0.015625, %v405_v40 }
  0x49   : > { %v447_v0 = vsel %vm446_vm2, %v409_v46, %v445_v57 }
  0x4a   : > { %v449_v1 = vsel %vm448_vm3, %v410_v51, %v447_v0 }
  0x4b   : > { %v451_v27 = vsel %vm450_vm4, %v411_v31, %v449_v1 }
  0x4c   : > { %v453_v2 = vsel %vm452_vm5, %v412_v53, %v451_v27 }
  0x4d   : > { %v455_v14 = vsel %vm454_vm6, %v413_v59, %v453_v2 }
  0x4e   : > { %473 = vmatmul.f32.vlgmr.msra.gmra.mxu0 %v455_v14 }
  0xcb   : > { %v474_v22 = vpop.f32.mrf.mxu0 }
  0xcc   : > { %v475_v13 = vadd.f32 %v764_v7, %v474_v22 }
  0xce   : > { %477 = vst [vmem:[%s166_s6] sm:$0xff] %v475_v13 }
  0xcf   : > { %792 = shalt.err (!%p789_p3)
}
  0xd0   : > { %725 = dma.vmem_to_hbm [thread:$0]  (%p884_p5), %s492_s7, 128, %s494_s8, %s479_s9  }
  0xd1 PF: > { %p731_p4 = scmp.ge.s32.totalorder %s827_s15, 2  ;;  %s505_s24 = sand.u32 1, %s815_s12  }
  0xd2   : > { %s506_s25 = scalar_lea.sflag [#allocation3], %s505_s24 }
  0xd3   : > { %p728_p7 = pnand %p731_p4, %p888_p6 }
  0xd5   : > { %p729_p8 = pneg %p728_p7 }
  0xd7   : > { %810 = dma.done.wait (%p729_p8), %s506_s25, 128  }
  0xd8   : > { %812 = vsyncadd (%p729_p8), %s506_s25, 4294967168  ;;  %p13_p9 = scmp.ge.s32.totalorder %s872_s18, 4   ;;  %s1257_s12 = smov %s819_s13 }
  0xd9   : > { %s1258_s13 = smov %s823_s14  ;;  %s1259_s14 = smov %s882_s21 }
  0xda   : > { %s1260_s15 = smov %s872_s18  ;;  %15 = sbr.rel (!%p13_p9) target bundleno = 3 (0x3), region = 67 }
  0xdf   :  { %512 = vsyncpa [#allocation3], 1 }
  0xe0   :  { %514 = vsyncpa [#allocation3 + $0x1], 1 }

</bundles_post_ra>
